<compile_context>
chip_gen: v6e
topology: v6e:2x2x1
jax: 0.10.0
libtpu: 0.0.40
codegen_flags: <defaults>
</compile_context>

<pallas_src>
import math

import jax
import jax.numpy as jnp
from jax.experimental import pallas as pl
from jax.experimental.pallas import tpu as pltpu

_LANE = 128
# ~2 MiB of output per grid step (=> ~4 MiB combined in+out traffic per step).
_TARGET_OUT_TILE_BYTES = 2 * 1024 * 1024


def _sublane_multiple(dtype) -> int:
    # Sublane packing granularity: 8 rows for 32-bit, 16 for 16-bit, 32 for 8-bit.
    return max(8, 32 // jnp.dtype(dtype).itemsize)


def _group_size(word_dim: int, char_dim: int) -> int:
    # Smallest G such that G*word_dim and G*char_dim are multiples of 128.
    # Both factors are powers of two dividing 128, so lcm == max.
    gw = _LANE // math.gcd(_LANE, word_dim)
    gc = _LANE // math.gcd(_LANE, char_dim)
    return max(gw, gc)


def _make_concat_kernel(group: int, word_dim: int, char_dim: int):
    def kernel(word_ref, char_ref, out_ref):
        w = word_ref[...]  # (tile_r, group * word_dim)   lane-dense
        c = char_ref[...]  # (tile_r, group * char_dim)   lane-dense
        parts = []
        for g in range(group):  # static interleave of the G packed rows
            parts.append(w[:, g * word_dim:(g + 1) * word_dim])
            parts.append(c[:, g * char_dim:(g + 1) * char_dim])
        # Single lane-dense (tile_r, group*(word_dim+char_dim)) store.
        out_ref[...] = jnp.concatenate(parts, axis=-1)

    return kernel


def concat_char_fuser(word_emb, char_emb, *, target_tile_bytes=_TARGET_OUT_TILE_BYTES):
    """Pallas equivalent of ConcatCharFuser.forward: cat([word, char], -1)."""
    assert word_emb.shape[:-1] == char_emb.shape[:-1], "leading dims must match"
    assert word_emb.dtype == char_emb.dtype, "dtypes must match"

    lead = word_emb.shape[:-1]
    W = word_emb.shape[-1]
    C = char_emb.shape[-1]
    out_dim = W + C
    dtype = word_emb.dtype
    itemsize = jnp.dtype(dtype).itemsize

    rows = 1
    for d in lead:
        rows *= d

    if rows == 0 or out_dim == 0:
        return jnp.zeros((*lead, out_dim), dtype)
    if W == 0 or C == 0:
        # Degenerate concat: nothing to interleave.
        return jnp.concatenate([word_emb, char_emb], axis=-1)

    # Lane-dense grouping (free wrapper-side reshapes). Fall back to plain
    # row tiling when rows don't divide evenly by the group.
    group = _group_size(W, C)
    if group > 1 and (group > _LANE or rows % group != 0):
        group = 1

    n_rows = rows // group
    w_cols, c_cols, o_cols = group * W, group * C, group * out_dim

    w2 = word_emb.reshape(n_rows, w_cols)
    c2 = char_emb.reshape(n_rows, c_cols)

    # Bytes-driven row tile, rounded to the dtype's sublane granularity.
    m = _sublane_multiple(dtype)
    row_bytes = o_cols * itemsize
    tile_r = max(m, target_tile_bytes // row_bytes)
    if tile_r >= n_rows:
        tile_r = n_rows  # full-extent block: always a legal block dim
    else:
        tile_r = max(m, (tile_r // m) * m)
    num_tiles = pl.cdiv(n_rows, tile_r)  # ragged last block handled by Pallas

    out = pl.pallas_call(
        _make_concat_kernel(group, W, C),
        out_shape=jax.ShapeDtypeStruct((n_rows, o_cols), dtype),
        grid=(num_tiles,),
        in_specs=[
            pl.BlockSpec((tile_r, w_cols), lambda i: (i, 0)),
            pl.BlockSpec((tile_r, c_cols), lambda i: (i, 0)),
        ],
        out_specs=pl.BlockSpec((tile_r, o_cols), lambda i: (i, 0)),
        compiler_params=pltpu.CompilerParams(
            dimension_semantics=("parallel",),
        ),
        cost_estimate=pl.CostEstimate(
            flops=0,
            transcendentals=0,
            bytes_accessed=2 * rows * out_dim * itemsize,
        ),
    )(w2, c2)

    # Free reshape back: (n_rows, group*(W+C)) is row-major identical to
    # (rows, W+C) and hence to (*lead, W+C).
    return out.reshape(*lead, out_dim)


if __name__ == "__main__":
    key = jax.random.PRNGKey(0)
    k_w, k_c = jax.random.split(key, 2)

    # Small shapes consistent with the module: (batch, seq, dim) embeddings.
    batch, seq, word_dim, char_dim = 2, 8, 48, 16
    word_emb = jax.random.normal(k_w, (batch, seq, word_dim), jnp.float32)
    char_emb = jax.random.normal(k_c, (batch, seq, char_dim), jnp.float32)

    out = concat_char_fuser(word_emb, char_emb)
    out = jax.block_until_ready(out)

    ref = jnp.concatenate([word_emb, char_emb], axis=-1)
    assert out.shape == (batch, seq, word_dim + char_dim)
    assert bool(jnp.array_equal(out, ref))

    # Second tiny check: rows not divisible by the lane-dense group -> plain
    # row-tiled fallback path (block last dims equal the full array dims).
    k_w2, k_c2 = jax.random.split(k_c, 2)
    word_emb2 = jax.random.normal(k_w2, (3, 5, word_dim), jnp.float32)
    char_emb2 = jax.random.normal(k_c2, (3, 5, char_dim), jnp.float32)
    out2 = jax.block_until_ready(concat_char_fuser(word_emb2, char_emb2))
    ref2 = jnp.concatenate([word_emb2, char_emb2], axis=-1)
    assert bool(jnp.array_equal(out2, ref2))

    print("KERNEL_OK")
</pallas_src>

<mosaic_0001>
module attributes {stable_mosaic.version = 11 : i64} {
  func.func @kernel(%arg0: i32, %arg1: memref<2x384xf32, #tpu.memory_space<vmem>>, %arg2: memref<2x128xf32, #tpu.memory_space<vmem>>, %arg3: memref<2x512xf32, #tpu.memory_space<vmem>>) attributes {dimension_semantics = [#tpu.dimension_semantics<parallel>], iteration_bounds = array<i64: 1>, scalar_prefetch = 0 : i64, scratch_operands = 0 : i64, tpu.core_type = #tpu.core_type<tc>, window_params = [{transform_indices = @transform_0, window_bounds = array<i64: 2, 384>}, {transform_indices = @transform_1, window_bounds = array<i64: 2, 128>}, {transform_indices = @transform_2, window_bounds = array<i64: 2, 512>}]} {
    %c0 = arith.constant 0 : index
    %c0_0 = arith.constant 0 : index
    %0 = vector.load %arg1[%c0, %c0_0] : memref<2x384xf32, #tpu.memory_space<vmem>>, vector<2x384xf32>
    %c0_1 = arith.constant 0 : index
    %c0_2 = arith.constant 0 : index
    %1 = vector.load %arg2[%c0_1, %c0_2] : memref<2x128xf32, #tpu.memory_space<vmem>>, vector<2x128xf32>
    %2 = vector.extract_strided_slice %0 {offsets = [0, 0], sizes = [2, 48], strides = [1, 1]} : vector<2x384xf32> to vector<2x48xf32>
    %3 = vector.extract_strided_slice %1 {offsets = [0, 0], sizes = [2, 16], strides = [1, 1]} : vector<2x128xf32> to vector<2x16xf32>
    %4 = vector.extract_strided_slice %0 {offsets = [0, 48], sizes = [2, 48], strides = [1, 1]} : vector<2x384xf32> to vector<2x48xf32>
    %5 = vector.extract_strided_slice %1 {offsets = [0, 16], sizes = [2, 16], strides = [1, 1]} : vector<2x128xf32> to vector<2x16xf32>
    %6 = vector.extract_strided_slice %0 {offsets = [0, 96], sizes = [2, 48], strides = [1, 1]} : vector<2x384xf32> to vector<2x48xf32>
    %7 = vector.extract_strided_slice %1 {offsets = [0, 32], sizes = [2, 16], strides = [1, 1]} : vector<2x128xf32> to vector<2x16xf32>
    %8 = vector.extract_strided_slice %0 {offsets = [0, 144], sizes = [2, 48], strides = [1, 1]} : vector<2x384xf32> to vector<2x48xf32>
    %9 = vector.extract_strided_slice %1 {offsets = [0, 48], sizes = [2, 16], strides = [1, 1]} : vector<2x128xf32> to vector<2x16xf32>
    %10 = vector.extract_strided_slice %0 {offsets = [0, 192], sizes = [2, 48], strides = [1, 1]} : vector<2x384xf32> to vector<2x48xf32>
    %11 = vector.extract_strided_slice %1 {offsets = [0, 64], sizes = [2, 16], strides = [1, 1]} : vector<2x128xf32> to vector<2x16xf32>
    %12 = vector.extract_strided_slice %0 {offsets = [0, 240], sizes = [2, 48], strides = [1, 1]} : vector<2x384xf32> to vector<2x48xf32>
    %13 = vector.extract_strided_slice %1 {offsets = [0, 80], sizes = [2, 16], strides = [1, 1]} : vector<2x128xf32> to vector<2x16xf32>
    %14 = vector.extract_strided_slice %0 {offsets = [0, 288], sizes = [2, 48], strides = [1, 1]} : vector<2x384xf32> to vector<2x48xf32>
    %15 = vector.extract_strided_slice %1 {offsets = [0, 96], sizes = [2, 16], strides = [1, 1]} : vector<2x128xf32> to vector<2x16xf32>
    %16 = vector.extract_strided_slice %0 {offsets = [0, 336], sizes = [2, 48], strides = [1, 1]} : vector<2x384xf32> to vector<2x48xf32>
    %17 = vector.extract_strided_slice %1 {offsets = [0, 112], sizes = [2, 16], strides = [1, 1]} : vector<2x128xf32> to vector<2x16xf32>
    %18 = tpu.concatenate %2, %3, %4, %5, %6, %7, %8, %9, %10, %11, %12, %13, %14, %15, %16, %17 in 1 : vector<2x48xf32>, vector<2x16xf32>, vector<2x48xf32>, vector<2x16xf32>, vector<2x48xf32>, vector<2x16xf32>, vector<2x48xf32>, vector<2x16xf32>, vector<2x48xf32>, vector<2x16xf32>, vector<2x48xf32>, vector<2x16xf32>, vector<2x48xf32>, vector<2x16xf32>, vector<2x48xf32>, vector<2x16xf32> -> vector<2x512xf32>
    %c0_3 = arith.constant 0 : index
    %c0_4 = arith.constant 0 : index
    %19 = vector.load %arg3[%c0_3, %c0_4] : memref<2x512xf32, #tpu.memory_space<vmem>>, vector<2x512xf32>
    tpu.vector_store %arg3[%c0_3, %c0_4], %18 {strides = array<i32>} : memref<2x512xf32, #tpu.memory_space<vmem>>, vector<2x512xf32>,
    return
  }
  func.func @transform_0(%arg0: i32) -> (i32, i32) {
    %c0_i32 = arith.constant 0 : i32
    %c0_i32_0 = arith.constant 0 : i32
    return %arg0, %c0_i32 : i32, i32
  }
  func.func @transform_1(%arg0: i32) -> (i32, i32) {
    %c0_i32 = arith.constant 0 : i32
    %c0_i32_0 = arith.constant 0 : i32
    return %arg0, %c0_i32 : i32, i32
  }
  func.func @transform_2(%arg0: i32) -> (i32, i32) {
    %c0_i32 = arith.constant 0 : i32
    %c0_i32_0 = arith.constant 0 : i32
    return %arg0, %c0_i32 : i32, i32
  }
}

</mosaic_0001>

<bundles_post_ra>
// kernel: tpu_custom_call.1
= control target key start
LH: loop header
LB: loop body
LE: loop exit
PB: predicated region body
PF: predicated region fallthrough
CT: control target
= control target key end

     0   :  { %7 = vsyncpa [#allocation3], 0  ;;  %s279_s0 = inlined_call_operand.hbm [shape: f32[2,384], index: 0, kind: input, shape index: {}]   ;;  %s280_s1 = inlined_call_operand.hbm [shape: f32[2,128], index: 1, kind: input, shape index: {}]   ;;  %s281_s2 = inlined_call_operand.hbm [shape: f32[2,512], index: 2, kind: output, shape index: {}]  }
   0x1   :  { %8 = vsyncpa [#allocation6], 0 }
   0x2   :  { %9 = vsyncpa [#allocation4], 0  ;;  %s238_s9 = smov [#allocation2]   ;;  %s239_s11 = smov [#allocation5]  }
   0x3   :  { %s16_s10 = sshll.u32 %s238_s9, 4  ;;  %s26_s12 = sshll.u32 %s239_s11, 4  ;;  %s17_s10 = int_to_ptr.vmem [resolvable:$true] %s16_s10  ;;  %s27_s12 = int_to_ptr.vmem [resolvable:$true] %s26_s12 }
   0x4   :  { %s180_s13 = scalar_lea.vmem %s17_s10, 96  ;;  %p185_p1 = scmp.lt.s32.totalorder %s17_s10, %s17_s10 }
   0x5   :  { %p181_p0 = scmp.ne.s32.totalorder %s17_s10, %s180_s13  ;;  %p186_p2 = scmp.lt.s32.totalorder %s180_s13, %s180_s13 }
   0x7   :  { %p187_p3 = por %p186_p2, %p185_p1 }
   0x9   :  { %p188_p4 = pnand %p187_p3, %p181_p0 }
   0xb   :  { %191 = shalt.err (!%p188_p4)
}
   0xc   :  { %19 = dma.hbm_to_vmem [thread:$0]  %s279_s0, 96, %s17_s10, [#allocation3]  }
   0xd   :  { %s200_s16 = scalar_lea.vmem %s27_s12, 32  ;;  %p205_p6 = scmp.lt.s32.totalorder %s27_s12, %s27_s12 }
   0xe   :  { %p201_p5 = scmp.ne.s32.totalorder %s27_s12, %s200_s16  ;;  %p206_p7 = scmp.lt.s32.totalorder %s200_s16, %s200_s16 }
  0x10   :  { %p207_p8 = por %p206_p7, %p205_p6 }
  0x12   :  { %p208_p9 = pnand %p207_p8, %p201_p5 }
  0x14   :  { %211 = shalt.err (!%p208_p9)
}
  0x15   :  { %29 = dma.hbm_to_vmem [thread:$0]  %s280_s1, 32, %s27_s12, [#allocation6]  }
  0x16   :  { %232 = dma.done.wait [#allocation3], 96  }
  0x17   :  { %233 = vsyncadd [#allocation3], 4294967200 }
  0x18   :  { %234 = dma.done.wait [#allocation6], 32  }
  0x19   :  { %235 = vsyncadd [#allocation6], 4294967264  ;;  %v46_v0 = vlaneseq  ;;  %v240_v1 = vmov 1983009808   ;;  %v37_v6 = vld [vmem:[#allocation5] sm:$0x3] }
  0x1a   :  { %v44_v2 = vunpack.c.l.s4 %v240_v1  ;;  %v36_v7 = vld [vmem:[#allocation2] sm:$0x3f]  ;;  %s241_s0 = smov 48   ;;  %s242_s19 = smov 32   ;;  %vm91_vm0 = vcmask 654336   ;;  %vm61_vm1 = vcmask 261120  }
  0x1b   :  { %v47_v3 = vshrl.u32 %v46_v0, 7  ;;  %39 = vrot.lane.b32.xlu1 %v37_v6, %s241_s0  ;;  %s243_s1 = smov 16   ;;  %v79_v10 = vcombine.high %v36_v7, %v36_v7  ;;  %s244_s20 = smov 112   ;;  %vm106_vm2 = vcmask 392192   ;;  %vm108_vm3 = vcmask 523264  }
  0x1c   :  { %v45_v4 = vunpack.c.0.s8 %v44_v2  ;;  %s245_s21 = smov 64   ;;  %s246_s22 = smov 80   ;;  %vm110_vm4 = vcmask 916480  }
  0x1d   :  { %s247_s23 = smov 96   ;;  %s248_s24 = smov [#allocation7]  }
  0x1e   :  { %v270_v5 = vsub.s32 %v45_v4, %v47_v3  ;;  %s150_s25 = sshll.u32 %s248_s24, 4  ;;  %s151_s25 = int_to_ptr.vmem [resolvable:$true] %s150_s25 }
  0x1f   :  { %64 = vrot.lane.b32.xlu1 %v37_v6, %s243_s1  ;;  %s212_s26 = scalar_lea.vmem %s151_s25, 128  ;;  %p217_p11 = scmp.lt.s32.totalorder %s151_s25, %s151_s25 }
  0x20   :  { %v49_v8 = vrot.slane %v36_v7, %v270_v5  ;;  %v86_v11 = vrot.slane %v79_v10, %v270_v5  ;;  %p213_p10 = scmp.ne.s32.totalorder %s151_s25, %s212_s26  ;;  %p218_p12 = scmp.lt.s32.totalorder %s212_s26, %s212_s26 }
  0x22   :  { %57 = vrot.lane.b32.xlu0 %v49_v8, %s242_s19  ;;  %v56_v9 = vcombine.high %v49_v8, %v49_v8  ;;  %p219_p13 = por %p218_p12, %p217_p11 }
  0x23   :  { %76 = vrot.lane.b32.xlu1 %v37_v6, %s244_s20 }
  0x24   :  { %p220_p0 = pnand %p219_p13, %p213_p10 }
  0x26   :  { %59 = vrot.lane.b32.xlu0 %v56_v9, %s242_s19 }
  0x27   :  { %89 = vrot.lane.b32.xlu1 %v86_v11, %s246_s22 }
  0x2a   :  { %73 = vrot.lane.b32.xlu0 %v56_v9, %s245_s21 }
  0x2b   :  { %100 = vrot.lane.b32.xlu1 %v37_v6, %s246_s22 }
  0x2e   :  { %87 = vrot.lane.b32.xlu0 %v56_v9, %s246_s22 }
  0x2f   :  { %67 = vrot.lane.b32.xlu1 %v56_v9, %s241_s0 }
  0x32   :  { %97 = vrot.lane.b32.xlu0 %v86_v11, %s247_s23 }
  0x33   :  { %53 = vrot.lane.b32.xlu1 %v37_v6, %s247_s23 }
  0x36   :  { %50 = vrot.lane.b32.xlu0 %v49_v8, %s243_s1 }
  0x37   :  { %94 = vrot.lane.b32.xlu1 %v37_v6, %s242_s19 }
  0x3a   :  { %103 = vrot.lane.b32.xlu0 %v86_v11, %s244_s20 }
  0x3e   :  { %70 = vrot.lane.b32.xlu0 %v37_v6, %s245_s21 }
  0x8d   :  { %v40_v12 = vpop.permute.xlu1 %39 }
  0x8e   :  { %v107_v29 = vsel %vm106_vm2, %v36_v7, %v40_v12 }
  0x91   :  { %v65_v14 = vpop.permute.xlu1 %64 }
  0x94   :  { %v58_v13 = vpop.permute.xlu0 %57 }
  0x95   :  { %v77_v16 = vpop.permute.xlu1 %76 }
  0x98   :  { %v60_v15 = vpop.permute.xlu0 %59 }
  0x99   :  { %v90_v18 = vpop.permute.xlu1 %89  ;;  %v62_v26 = vsel %vm61_vm1, %v58_v13, %v60_v15 }
  0x9a   :  { %v112_v36 = vsel %vm106_vm2, %v62_v26, %v65_v14 }
  0x9c   :  { %v74_v17 = vpop.permute.xlu0 %73 }
  0x9d   :  { %v101_v20 = vpop.permute.xlu1 %100  ;;  %v115_v30 = vsel %vm106_vm2, %v74_v17, %v77_v16 }
  0xa0   :  { %v88_v19 = vpop.permute.xlu0 %87 }
  0xa1   :  { %v68_v22 = vpop.permute.xlu1 %67  ;;  %v92_v25 = vsel %vm91_vm0, %v88_v19, %v90_v18 }
  0xa2   :  { %v116_v34 = vsel %vm108_vm3, %v115_v30, %v92_v25  ;;  %v113_v38 = vsel %vm108_vm3, %v112_v36, %v68_v22 }
  0xa4   :  { %v98_v21 = vpop.permute.xlu0 %97 }
  0xa5   :  { %v54_v24 = vpop.permute.xlu1 %53  ;;  %v118_v27 = vsel %vm106_vm2, %v98_v21, %v101_v20 }
  0xa8   :  { %v51_v23 = vpop.permute.xlu0 %50 }
  0xa9   :  { %v109_v32 = vsel %vm108_vm3, %v107_v29, %v51_v23  ;;  %v95_v33 = vpop.permute.xlu1 %94 }
  0xaa   :  { %v117_v37 = vsel %vm110_vm4, %v116_v34, %v95_v33  ;;  %v111_v41 = vsel %vm110_vm4, %v109_v32, %v54_v24 }
  0xac   :  { %v104_v28 = vpop.permute.xlu0 %103 }
  0xad   :  { %v119_v31 = vsel %vm108_vm3, %v118_v27, %v104_v28 }
  0xae   :  { %v120_v35 = vsel %vm110_vm4, %v119_v31, %v37_v6 }
  0xaf   :  { %v126_v39 = vcombine.low %v117_v37, %v120_v35 }
  0xb0   :  { %v71_v40 = vpop.permute.xlu0 %70 }
  0xb1   :  { %v114_v42 = vsel %vm110_vm4, %v113_v38, %v71_v40  ;;  %v140_v44 = vrot.slane %v126_v39, %v270_v5 }
  0xb2   :  { %v125_v43 = vcombine.low %v111_v41, %v114_v42 }
  0xb4   :  { %v133_v45 = vrot.slane %v125_v43, %v270_v5 }
  0xb6   :  { %v141_v46 = vcombine.low %v133_v45, %v140_v44 }
  0xb8   :  { %143 = vst [vmem:[#allocation7] sm:$0xff] %v141_v46 }
  0xb9   :  { %223 = shalt.err (!%p220_p0)
}
  0xba   :  { %153 = dma.vmem_to_hbm [thread:$0]  %s151_s25, 128, %s281_s2, [#allocation4]  }
  0xbb   :  { %236 = dma.done.wait [#allocation4], 128  }
  0xbc   :  { %237 = vsyncadd [#allocation4], 4294967168 }
  0xbd   :  { %157 = vsyncpa [#allocation3], 1 }
  0xbe   :  { %158 = vsyncpa [#allocation6], 1 }
  0xbf   :  { %159 = vsyncpa [#allocation4], 1 }

</bundles_post_ra>
